<compile_context>
chip_gen: v6e
topology: v6e:2x2x1
jax: 0.10.0
libtpu: 0.0.40
codegen_flags: <defaults>
</compile_context>

<pallas_src>
import jax
import jax.numpy as jnp
from jax import lax
from jax.experimental import pallas as pl
from jax.experimental.pallas import tpu as pltpu


def _round_up(x, m):
    return ((x + m - 1) // m) * m


def _nt_dot(x, w):
    # x: (tm, tk), w: (tn, tk) -> (tm, tn); contraction on the last dims so
    # Mosaic drives the MXU with a transposed RHS and keeps N on lanes.
    return lax.dot_general(
        x, w,
        dimension_numbers=(((1,), (1,)), ((), ())),
        preferred_element_type=jnp.float32,
    )


def _linear_single_k_kernel(x_ref, w_ref, o_ref):
    # Full K in one tile: no reduction axis, no scratch, no phase gating.
    o_ref[...] = _nt_dot(x_ref[...], w_ref[...]).astype(o_ref.dtype)


def _linear_multi_k_f32_kernel(x_ref, w_ref, o_ref):
    # f32 output: accumulate directly into the VMEM-resident output block
    # (its index_map ignores k), saving the scratch and the final copy.
    @pl.when(pl.program_id(2) == 0)
    def _():
        o_ref[...] = jnp.zeros_like(o_ref)

    o_ref[...] += _nt_dot(x_ref[...], w_ref[...])


def _linear_multi_k_acc_kernel(x_ref, w_ref, o_ref, acc_ref):
    # Low-precision output: accumulate in an f32 VMEM scratch, store at the end.
    @pl.when(pl.program_id(2) == 0)
    def _():
        acc_ref[...] = jnp.zeros_like(acc_ref)

    acc_ref[...] += _nt_dot(x_ref[...], w_ref[...])

    @pl.when(pl.program_id(2) == pl.num_programs(2) - 1)
    def _():
        o_ref[...] = acc_ref[...].astype(o_ref.dtype)


def cs_dec_first_guess(x, weight, *, tm_max=512, tn_max=1024, tk_max=512):
    """y = x @ weight.T  (nn.Linear(m, n, bias=False); weight shape (n, m))."""
    orig_shape = x.shape
    K = orig_shape[-1]
    N, Kw = weight.shape
    assert K == Kw, f"feature mismatch: x has {K}, weight expects {Kw}"

    out_dtype = x.dtype
    # Match the kernel compute dtype to the activations; accumulation is f32.
    # (PyTorch would promote bf16 x against an f32 weight; we follow the
    #  activation dtype for operand streaming and note the divergence.)
    w = weight.astype(x.dtype)

    x2d = x.reshape(-1, K)                      # (M, K)
    M = x2d.shape[0]

    isz = jnp.dtype(x.dtype).itemsize
    osz = jnp.dtype(out_dtype).itemsize
    sub = max(8, 32 // isz)                     # sublane multiple for this dtype

    tm = min(tm_max, _round_up(M, sub))
    tn = min(tn_max, _round_up(N, 128))

    # Megacore heuristic: expose >= 2 blocks along a parallel axis so both
    # v7x TensorCores get work even for tiny-M (decode-style) calls.
    if pl.cdiv(M, tm) == 1 and pl.cdiv(N, tn) == 1:
        if N >= 256:
            tn = _round_up(pl.cdiv(N, 2), 128)
        elif M >= 2 * sub:
            tm = _round_up(pl.cdiv(M, 2), sub)

    grid_m = pl.cdiv(M, tm)
    grid_n = pl.cdiv(N, tn)

    if K <= tk_max:
        # ---- Fast path: single K tile (full K as the block's last dim). ----
        grid = (grid_m, grid_n)
        in_specs = [
            pl.BlockSpec((tm, K), lambda i, j: (i, 0)),
            pl.BlockSpec((tn, K), lambda i, j: (j, 0)),
        ]
        out_spec = pl.BlockSpec((tm, tn), lambda i, j: (i, j))
        kernel = _linear_single_k_kernel
        scratch = ()
        dims = ("parallel", "parallel")
        x_in, w_in = x2d, w
        # x fetched once (its block index ignores the fast j axis); weight
        # re-fetched per M tile; output written once.
        bytes_accessed = isz * (M * K + K * N * grid_m) + osz * M * N
    else:
        # ---- General path: tiled reduction over K (zero-padded tail). ----
        tk = tk_max
        Kp = _round_up(K, tk)
        x_in = jnp.pad(x2d, ((0, 0), (0, Kp - K))) if Kp != K else x2d
        w_in = jnp.pad(w, ((0, 0), (0, Kp - K))) if Kp != K else w
        grid = (grid_m, grid_n, Kp // tk)
        in_specs = [
            pl.BlockSpec((tm, tk), lambda i, j, k: (i, k)),
            pl.BlockSpec((tn, tk), lambda i, j, k: (j, k)),
        ]
        out_spec = pl.BlockSpec((tm, tn), lambda i, j, k: (i, j))
        dims = ("parallel", "parallel", "arbitrary")
        if out_dtype == jnp.float32:
            kernel = _linear_multi_k_f32_kernel
            scratch = ()
        else:
            kernel = _linear_multi_k_acc_kernel
            scratch = (pltpu.VMEM((tm, tn), jnp.float32),)
        bytes_accessed = isz * (M * Kp * grid_n + Kp * N * grid_m) + osz * M * N

    cost = pl.CostEstimate(
        flops=2 * M * K * N,
        transcendentals=0,
        bytes_accessed=int(bytes_accessed),
    )

    out = pl.pallas_call(
        kernel,
        out_shape=jax.ShapeDtypeStruct((M, N), out_dtype),
        grid_spec=pltpu.PrefetchScalarGridSpec(
            num_scalar_prefetch=0,
            grid=grid,
            in_specs=in_specs,
            out_specs=out_spec,
            scratch_shapes=scratch,
        ),
        compiler_params=pltpu.CompilerParams(
            dimension_semantics=dims,
            vmem_limit_bytes=32 * 1024 * 1024,
        ),
        cost_estimate=cost,
    )(x_in, w_in)

    return out.reshape(*orig_shape[:-1], N)


def _reference(x, weight):
    return jnp.dot(x, weight.T)


if __name__ == "__main__":
    key = jax.random.PRNGKey(0)

    # Shapes implied by the module: Linear(m=32 -> n=64, bias=False), batch=2.
    batch, m, n = 2, 32, 64
    k_x, k_w = jax.random.split(key, 2)
    x = jax.random.normal(k_x, (batch, m), dtype=jnp.float32)
    bound = 1.0 / (m ** 0.5)                    # PyTorch-style fan-in init
    w = jax.random.uniform(k_w, (n, m), jnp.float32, -bound, bound)

    y = cs_dec_first_guess(x, w)
    jax.block_until_ready(y)
    assert y.shape == (batch, n)
    assert jnp.allclose(y, _reference(x, w), atol=1e-5, rtol=1e-5)

    # Also exercise the multi-K-tile (reduction-grid) path at small scale.
    Mb, Kb, Nb = 16, 640, 256                   # K > 512 -> K grid axis + pad
    k_x2, k_w2 = jax.random.split(k_w, 2)
    x2 = jax.random.normal(k_x2, (Mb, Kb), dtype=jnp.float32)
    b2 = 1.0 / (Kb ** 0.5)
    w2 = jax.random.uniform(k_w2, (Nb, Kb), jnp.float32, -b2, b2)
    y2 = cs_dec_first_guess(x2, w2)
    jax.block_until_ready(y2)
    assert y2.shape == (Mb, Nb)
    assert jnp.allclose(y2, _reference(x2, w2), atol=1e-4, rtol=1e-4)

    print("KERNEL_OK")
</pallas_src>

<mosaic_0001>
module attributes {stable_mosaic.version = 11 : i64} {
  func.func @_linear_single_k_kernel(%arg0: i32, %arg1: i32, %arg2: memref<8x32xf32, #tpu.memory_space<vmem>>, %arg3: memref<128x32xf32, #tpu.memory_space<vmem>>, %arg4: memref<8x128xf32, #tpu.memory_space<vmem>>) attributes {dimension_semantics = [#tpu.dimension_semantics<parallel>, #tpu.dimension_semantics<parallel>], iteration_bounds = array<i64: 1, 1>, scalar_prefetch = 0 : i64, scratch_operands = 0 : i64, tpu.core_type = #tpu.core_type<tc>, window_params = [{transform_indices = @transform_0, window_bounds = array<i64: 8, 32>}, {transform_indices = @transform_1, window_bounds = array<i64: 128, 32>}, {transform_indices = @transform_2, window_bounds = array<i64: 8, 128>}]} {
    %c0 = arith.constant 0 : index
    %c0_0 = arith.constant 0 : index
    %0 = vector.load %arg2[%c0, %c0_0] : memref<8x32xf32, #tpu.memory_space<vmem>>, vector<8x32xf32>
    %c0_1 = arith.constant 0 : index
    %c0_2 = arith.constant 0 : index
    %1 = vector.load %arg3[%c0_1, %c0_2] : memref<128x32xf32, #tpu.memory_space<vmem>>, vector<128x32xf32>
    %cst = arith.constant dense<0.000000e+00> : vector<8x128xf32>
    %2 = tpu.matmul %0, %1, %cst {dimension_numbers = #tpu.dot_dimension_numbers<[1], [1], [0], [0], [0, 0, 1, 0], [], []>} : vector<8x32xf32>, vector<128x32xf32>, vector<8x128xf32> -> vector<8x128xf32>
    %c0_3 = arith.constant 0 : index
    %c0_4 = arith.constant 0 : index
    %3 = vector.load %arg4[%c0_3, %c0_4] : memref<8x128xf32, #tpu.memory_space<vmem>>, vector<8x128xf32>
    tpu.vector_store %arg4[%c0_3, %c0_4], %2 {strides = array<i32>} : memref<8x128xf32, #tpu.memory_space<vmem>>, vector<8x128xf32>,
    return
  }
  func.func @transform_0(%arg0: i32, %arg1: i32) -> (i32, i32) {
    %c0_i32 = arith.constant 0 : i32
    %c0_i32_0 = arith.constant 0 : i32
    return %arg0, %c0_i32 : i32, i32
  }
  func.func @transform_1(%arg0: i32, %arg1: i32) -> (i32, i32) {
    %c0_i32 = arith.constant 0 : i32
    %c0_i32_0 = arith.constant 0 : i32
    return %arg1, %c0_i32 : i32, i32
  }
  func.func @transform_2(%arg0: i32, %arg1: i32) -> (i32, i32) {
    %c0_i32 = arith.constant 0 : i32
    return %arg0, %arg1 : i32, i32
  }
}

</mosaic_0001>

<bundles_post_ra>
// kernel: tpu_custom_call.1
= control target key start
LH: loop header
LB: loop body
LE: loop exit
PB: predicated region body
PF: predicated region fallthrough
CT: control target
= control target key end

     0   :  { %7 = vsyncpa [#allocation3], 0  ;;  %vm29_vm0 = vcmask 261120   ;;  %v264_v1 = vmov 0.0   ;;  %vm265_vm1 = vmmov 0   ;;  %s355_s0 = inlined_call_operand.vmem [shape: f32[2,32], index: 0, kind: input, shape index: {}]   ;;  %s356_s1 = inlined_call_operand.vmem [shape: f32[64,32], index: 1, kind: input, shape index: {}]   ;;  %s357_s2 = inlined_call_operand.hbm [shape: f32[2,64], index: 2, kind: output, shape index: {}]  }
   0x1   :  { %v28_v0 = vld [vmem:[%s356_s1 + $0x78] sm:$0xff]  ;;  %202 = vmatprep.subr.mxu0 %v264_v1  ;;  %234 = vmatprep.mubr.msk.f32.mxu0 %vm265_vm1, %v264_v1  ;;  %v27_v2 = vld [vmem:[%s356_s1 + $0x70] sm:$0xff]  ;;  %v26_v3 = vld [vmem:[%s356_s1 + $0x68] sm:$0xff] }
   0x2   :  { %203 = vmatpush3.xpose.msk.msra.mxu0 %vm29_vm0, %v28_v0  ;;  %v25_v4 = vld [vmem:[%s356_s1 + $0x60] sm:$0xff]  ;;  %v24_v5 = vld [vmem:[%s356_s1 + $0x58] sm:$0xff]  ;;  %v23_v6 = vld [vmem:[%s356_s1 + $0x50] sm:$0xff] }
   0x3   :  { %204 = vmatprep.subr.mxu0 %v264_v1  ;;  %v22_v7 = vld [vmem:[%s356_s1 + $0x48] sm:$0xff]  ;;  %v21_v8 = vld [vmem:[%s356_s1 + $0x40] sm:$0xff]  ;;  %v20_v9 = vld [vmem:[%s356_s1 + $0x38] sm:$0xff] }
   0x4   :  { %v19_v10 = vld [vmem:[%s356_s1 + $0x30] sm:$0xff]  ;;  %v18_v11 = vld [vmem:[%s356_s1 + $0x28] sm:$0xff]  ;;  %v17_v12 = vld [vmem:[%s356_s1 + $0x20] sm:$0xff] }
   0x5   :  { %v16_v13 = vld [vmem:[%s356_s1 + $0x18] sm:$0xff]  ;;  %v15_v14 = vld [vmem:[%s356_s1 + $0x10] sm:$0xff]  ;;  %v14_v15 = vld [vmem:[%s356_s1 + $0x8] sm:$0xff] }
   0x6   :  { %205 = vmatpush3.xpose.msk.msra.mxu0 %vm29_vm0, %v27_v2  ;;  %v13_v16 = vld [vmem:[%s356_s1] sm:$0xff] }
   0x7   :  { %206 = vmatprep.subr.mxu0 %v264_v1  ;;  %v12_v17 = vld [vmem:[%s355_s0] sm:$0xff] }
   0xa   :  { %207 = vmatpush3.xpose.msk.msra.mxu0 %vm29_vm0, %v26_v3 }
   0xb   :  { %208 = vmatprep.subr.mxu0 %v264_v1 }
   0xe   :  { %209 = vmatpush3.xpose.msk.msra.mxu0 %vm29_vm0, %v25_v4 }
   0xf   :  { %210 = vmatprep.subr.mxu0 %v264_v1 }
  0x12   :  { %211 = vmatpush3.xpose.msk.msra.mxu0 %vm29_vm0, %v24_v5 }
  0x13   :  { %212 = vmatprep.subr.mxu0 %v264_v1 }
  0x16   :  { %213 = vmatpush3.xpose.msk.msra.mxu0 %vm29_vm0, %v23_v6 }
  0x17   :  { %214 = vmatprep.subr.mxu0 %v264_v1 }
  0x1a   :  { %215 = vmatpush3.xpose.msk.msra.mxu0 %vm29_vm0, %v22_v7 }
  0x1b   :  { %216 = vmatprep.subr.mxu0 %v264_v1 }
  0x1e   :  { %217 = vmatpush3.xpose.msk.msra.mxu0 %vm29_vm0, %v21_v8 }
  0x1f   :  { %218 = vmatprep.subr.mxu0 %v264_v1 }
  0x22   :  { %219 = vmatpush3.xpose.msk.msra.mxu0 %vm29_vm0, %v20_v9 }
  0x23   :  { %220 = vmatprep.subr.mxu0 %v264_v1 }
  0x26   :  { %221 = vmatpush3.xpose.msk.msra.mxu0 %vm29_vm0, %v19_v10 }
  0x27   :  { %222 = vmatprep.subr.mxu0 %v264_v1 }
  0x2a   :  { %223 = vmatpush3.xpose.msk.msra.mxu0 %vm29_vm0, %v18_v11 }
  0x2b   :  { %224 = vmatprep.subr.mxu0 %v264_v1 }
  0x2e   :  { %225 = vmatpush3.xpose.msk.msra.mxu0 %vm29_vm0, %v17_v12 }
  0x2f   :  { %226 = vmatprep.subr.mxu0 %v264_v1 }
  0x32   :  { %227 = vmatpush3.xpose.msk.msra.mxu0 %vm29_vm0, %v16_v13 }
  0x33   :  { %228 = vmatprep.subr.mxu0 %v264_v1 }
  0x36   :  { %229 = vmatpush3.xpose.msk.msra.mxu0 %vm29_vm0, %v15_v14 }
  0x37   :  { %230 = vmatprep.subr.mxu0 %v264_v1 }
  0x3a   :  { %231 = vmatpush3.xpose.msk.msra.mxu0 %vm29_vm0, %v14_v15 }
  0x3b   :  { %232 = vmatprep.subr.mxu0 %v264_v1 }
  0x3e   :  { %233 = vmatpush3.xpose.msk.msra.mxu0 %vm29_vm0, %v13_v16 }
  0x41   :  { %235 = vmatmul.mubr.msk.f32.vlgmr.msra.gmra.mxu0 %vm29_vm0, %v12_v17 }
 0x101   :  { %v147_v18 = vpop.f32.mrf.mxu0 }
 0x102   :  { %151 = vst [vmem:[#allocation2] sm:$0xff] %v147_v18 }
 0x103   :  { %v236_v19 = vpop.f32.mrf.mxu0 }
 0x104   :  { %156 = vsyncadd [#allocation3], 96  ;;  %s266_s15 = smov [#allocation2]  }
 0x105   :  { %s157_s16 = sshll.u32 %s266_s15, 4  ;;  %s158_s16 = int_to_ptr.vmem [resolvable:$true] %s157_s16 }
 0x106   :  { %s242_s17 = scalar_lea.vmem %s158_s16, 32  ;;  %s246_s18 = scalar_lea.vmem %s158_s16, 128 }
 0x107   :  { %p243_p0 = scmp.ne.s32.totalorder %s158_s16, %s242_s17  ;;  %p247_p1 = scmp.lt.s32.totalorder %s158_s16, %s158_s16 }
 0x108   :  { %p248_p2 = scmp.lt.s32.totalorder %s246_s18, %s242_s17 }
 0x10a   :  { %p249_p3 = por %p248_p2, %p247_p1 }
 0x10c   :  { %p250_p4 = pnand %p249_p3, %p243_p0 }
 0x10e   :  { %253 = shalt.err (!%p250_p4)
}
 0x10f   :  { %s267_s1 = smov 32   ;;  %s268_s19 = smov 2  }
 0x110   :  { %163 = dma.vmem_to_hbm [thread:$0]  %s158_s16, 32, %s357_s2, [#allocation3], %s267_s1, %s267_s1, %s268_s19  }
 0x111   :  { %262 = dma.done.wait [#allocation3], 128  }
 0x112   :  { %263 = vsyncadd [#allocation3], 4294967168 }
 0x113   :  { %167 = vsyncpa [#allocation3], 1 }

</bundles_post_ra>
